<compile_context>
chip_gen: v5e
topology: v5e:2x2
jax: 0.10.0
libtpu: 0.0.40
codegen_flags: <defaults>
</compile_context>

<pallas_src>
import functools

import jax
import jax.numpy as jnp
from jax.experimental import pallas as pl
from jax.experimental.pallas import tpu as pltpu


def _cdiv(a: int, b: int) -> int:
    return (a + b - 1) // b


def _round_up(a: int, b: int) -> int:
    return _cdiv(a, b) * b


@functools.lru_cache(maxsize=1)
def _vmem_budget_bytes() -> int:
    """Physical VMEM minus headroom for compiler-internal scratch."""
    try:
        cap = int(pltpu.get_tpu_info().vmem_capacity_bytes)
    except Exception:
        cap = 128 * 1024 * 1024          # safe fallback (v5e/v6e class)
    headroom = max(8 * 1024 * 1024, cap // 8)   # 8 MiB on v7x, 16 MiB on 128-MiB chips
    return cap - headroom


def _pick_h_tile(H: int, max_th: int) -> int:
    """Largest multiple of 128 that divides H and is <= max_th."""
    t = max(128, min(max_th, H))
    t = (t // 128) * 128
    while H % t != 0:
        t -= 128
    return t


def choose_h_tile(D: int, H: int, *, max_th: int = 1024,
                  compute_dtype=jnp.bfloat16) -> int:
    """H tile: H itself (fully VMEM-resident weights, DMA'd once) when the
    double-buffered fused weights fit in ~half the VMEM budget; otherwise the
    largest divisor <= max_th whose double-buffered tiles fit in half."""
    assert H % 128 == 0, "hidden size must be a multiple of 128 (lane width)"
    budget = _vmem_budget_bytes()
    cbytes = jnp.dtype(compute_dtype).itemsize

    def w_vmem(th):
        # double-buffered w13 + b13 + w2 + b2 tiles
        return 2 * (D * 2 * th * cbytes + 2 * th * 4 + th * D * cbytes + D * 4)

    if w_vmem(H) <= budget // 2:
        return H
    th = _pick_h_tile(H, max_th)
    while th > 128 and w_vmem(th) > budget // 2:
        th = _pick_h_tile(H, th - 128)
    return th


def pack_swiglu_weights(w1, b1, w3, b3, w2, b2, *, th=None,
                        compute_dtype=jnp.bfloat16):
    """Pre-pack PyTorch nn.Linear-convention SwiGLU weights for the kernel.

    w1, w3: (H, D); b1, b3: (H,); w2: (D, H); b2: (D,).
    Returns (w13, b13, w2_t, b2_r, th) where H-tile k of w13 is [w1_k | w3_k].
    Call ONCE at model init -- these transposes/concats are separate XLA ops
    and should not run on every forward."""
    H, D = w1.shape
    if th is None:
        th = choose_h_tile(D, H, compute_dtype=compute_dtype)
    assert H % th == 0 and th % 128 == 0
    nH = H // th
    w1_t = w1.T.astype(compute_dtype)                         # (D, H)
    w3_t = w3.T.astype(compute_dtype)                         # (D, H)
    w13 = jnp.concatenate(
        [w1_t.reshape(D, nH, th), w3_t.reshape(D, nH, th)], axis=2
    ).reshape(D, 2 * H)                                       # (D, 2H)
    b13 = jnp.concatenate(
        [b1.astype(jnp.float32).reshape(nH, th),
         b3.astype(jnp.float32).reshape(nH, th)], axis=1
    ).reshape(1, 2 * H)                                       # (1, 2H)
    w2_t = w2.T.astype(compute_dtype)                         # (H, D)
    b2_r = b2.astype(jnp.float32).reshape(1, D)               # (1, D)
    return w13, b13, w2_t, b2_r, th


def _swiglu_kernel_resident(x_ref, w13_ref, b13_ref, w2_ref, b2_ref, o_ref, *, th):
    """nH == 1: weights fully resident (constant index maps), no accumulator."""
    h13 = jnp.dot(x_ref[...], w13_ref[...],
                  preferred_element_type=jnp.float32) + b13_ref[...]
    h1 = h13[:, :th]
    h3 = h13[:, th:]
    g = (h1 * jax.nn.sigmoid(h1)) * h3            # SiLU(h1) * h3 in f32
    o_ref[...] = (
        jnp.dot(g.astype(w2_ref.dtype), w2_ref[...],
                preferred_element_type=jnp.float32) + b2_ref[...]
    ).astype(o_ref.dtype)


def _swiglu_kernel_tiled(x_ref, w13_ref, b13_ref, w2_ref, b2_ref, o_ref,
                         acc_ref, *, th):
    """General case: H is a reduction grid axis, f32 accumulator across it."""
    k = pl.program_id(1)

    @pl.when(k == 0)
    def _():
        acc_ref[...] = jnp.zeros_like(acc_ref)

    h13 = jnp.dot(x_ref[...], w13_ref[...],
                  preferred_element_type=jnp.float32) + b13_ref[...]
    h1 = h13[:, :th]
    h3 = h13[:, th:]
    g = (h1 * jax.nn.sigmoid(h1)) * h3
    acc_ref[...] += jnp.dot(g.astype(w2_ref.dtype), w2_ref[...],
                            preferred_element_type=jnp.float32)

    @pl.when(k == pl.num_programs(1) - 1)
    def _():
        o_ref[...] = (acc_ref[...] + b2_ref[...]).astype(o_ref.dtype)


@functools.partial(jax.jit, static_argnames=("th", "tm_target", "out_dtype"))
def swiglu_ffn_packed(x, w13, b13, w2_t, b2_r, *, th, tm_target=None,
                      out_dtype=None):
    """Hot-path forward. x: (..., D); packed weights from pack_swiglu_weights."""
    D = x.shape[-1]
    H = w2_t.shape[0]
    assert H % th == 0
    nH = H // th
    T = 1
    for s in x.shape[:-1]:
        T *= s
    out_dtype = jnp.dtype(out_dtype) if out_dtype is not None else x.dtype
    compute_dtype = w13.dtype

    budget = _vmem_budget_bytes()
    cbytes = jnp.dtype(compute_dtype).itemsize
    obytes = jnp.dtype(out_dtype).itemsize
    if tm_target is None:
        # 128-MiB chips (v5e/v6e): tm=1024 pushes past the weight-restream ridge.
        # 64-MiB chips (v7x): tm=512 is comfortably compute-bound (~310 FLOP/B ridge).
        tm_target = 1024 if budget >= 96 * 1024 * 1024 else 512

    # VMEM held by (double-buffered) weight tiles; the remainder funds tokens.
    w_vmem = 2 * (D * 2 * th * cbytes + 2 * th * 4 + th * D * cbytes + D * 4)
    per_row = 2 * D * cbytes + 2 * D * obytes + (D * 4 if nH > 1 else 0)
    tm_cap = max(8, ((budget - w_vmem) // per_row) // 8 * 8)
    tm = max(8, min(tm_target, tm_cap))

    # >= 2 token blocks when possible (2-TC sharding on v7x); ragged-T friendly.
    n_blocks = _cdiv(T, tm)
    if n_blocks == 1 and T >= 16:
        n_blocks = 2
    tm_eff = min(tm, _round_up(_cdiv(T, n_blocks), 8))
    T_pad = _round_up(T, tm_eff)
    nT = T_pad // tm_eff

    x2 = x.reshape(T, D)
    if T_pad != T:
        x2 = jnp.pad(x2, ((0, T_pad - T), (0, 0)))
    x2 = x2.astype(compute_dtype)

    if nH == 1:
        # Weights resident: constant index maps -> DMA'd once for the whole grid;
        # no accumulator scratch, output written directly.
        out2 = pl.pallas_call(
            functools.partial(_swiglu_kernel_resident, th=th),
            out_shape=jax.ShapeDtypeStruct((T_pad, D), out_dtype),
            grid_spec=pltpu.PrefetchScalarGridSpec(
                num_scalar_prefetch=0,
                grid=(nT,),
                in_specs=[
                    pl.BlockSpec((tm_eff, D), lambda i: (i, 0)),   # x tile
                    pl.BlockSpec((D, 2 * th), lambda i: (0, 0)),   # fused w1|w3
                    pl.BlockSpec((1, 2 * th), lambda i: (0, 0)),   # fused b1|b3
                    pl.BlockSpec((th, D), lambda i: (0, 0)),       # w2
                    pl.BlockSpec((1, D), lambda i: (0, 0)),        # b2
                ],
                out_specs=pl.BlockSpec((tm_eff, D), lambda i: (i, 0)),
            ),
            compiler_params=pltpu.CompilerParams(
                dimension_semantics=("parallel",),
                vmem_limit_bytes=int(budget),
            ),
        )(x2, w13, b13, w2_t, b2_r)
    else:
        out2 = pl.pallas_call(
            functools.partial(_swiglu_kernel_tiled, th=th),
            out_shape=jax.ShapeDtypeStruct((T_pad, D), out_dtype),
            grid_spec=pltpu.PrefetchScalarGridSpec(
                num_scalar_prefetch=0,
                grid=(nT, nH),                  # tokens parallel, H reduction last
                in_specs=[
                    pl.BlockSpec((tm_eff, D), lambda i, k: (i, 0)),
                    pl.BlockSpec((D, 2 * th), lambda i, k: (0, k)),
                    pl.BlockSpec((1, 2 * th), lambda i, k: (0, k)),
                    pl.BlockSpec((th, D), lambda i, k: (k, 0)),
                    pl.BlockSpec((1, D), lambda i, k: (0, 0)),
                ],
                out_specs=pl.BlockSpec((tm_eff, D), lambda i, k: (i, 0)),
                scratch_shapes=[pltpu.VMEM((tm_eff, D), jnp.float32)],
            ),
            compiler_params=pltpu.CompilerParams(
                dimension_semantics=("parallel", "arbitrary"),
                vmem_limit_bytes=int(budget),
            ),
        )(x2, w13, b13, w2_t, b2_r)

    return out2[:T].reshape(x.shape)


def swiglu_ffn(x, w1, b1, w3, b3, w2, b2, *, compute_dtype=jnp.bfloat16,
               tm_target=None):
    """Convenience wrapper (packs every call). For production, call
    pack_swiglu_weights() once at init and use swiglu_ffn_packed()."""
    w13, b13, w2_t, b2_r, th = pack_swiglu_weights(
        w1, b1, w3, b3, w2, b2, compute_dtype=compute_dtype)
    return swiglu_ffn_packed(x, w13, b13, w2_t, b2_r, th=th, tm_target=tm_target)


def _reference(x, w1, b1, w3, b3, w2, b2):
    h1 = x @ w1.T + b1
    h3 = x @ w3.T + b3
    g = jax.nn.silu(h1) * h3
    return g @ w2.T + b2


if __name__ == "__main__":
    # Module hyper-params (same formula as SwiGLUFFN.__init__, small demo sizes).
    dim = 128
    multiple_of = 128
    ffn_dim_multiplier = 1.3
    hidden_size = int(ffn_dim_multiplier * 8 * dim // 3)
    hidden_size = multiple_of * ((hidden_size + multiple_of - 1) // multiple_of)  # 512

    batch, seq = 2, 8

    key = jax.random.PRNGKey(0)
    kx, k1, kb1, k3, kb3, k2, kb2 = jax.random.split(key, 7)

    x = jax.random.normal(kx, (batch, seq, dim), dtype=jnp.float32)
    # nn.Linear shapes: weight (out, in), bias (out,).
    w1 = jax.random.normal(k1, (hidden_size, dim), dtype=jnp.float32) * 0.02
    b1 = jax.random.normal(kb1, (hidden_size,), dtype=jnp.float32) * 0.02
    w3 = jax.random.normal(k3, (hidden_size, dim), dtype=jnp.float32) * 0.02
    b3 = jax.random.normal(kb3, (hidden_size,), dtype=jnp.float32) * 0.02
    w2 = jax.random.normal(k2, (dim, hidden_size), dtype=jnp.float32) * 0.02
    b2 = jax.random.normal(kb2, (dim,), dtype=jnp.float32) * 0.02

    # Pre-pack once (init-time), then run the packed hot path.
    w13, b13, w2_t, b2_r, th = pack_swiglu_weights(w1, b1, w3, b3, w2, b2)
    (w13, b13, w2_t, b2_r) = jax.block_until_ready((w13, b13, w2_t, b2_r))

    out = swiglu_ffn_packed(x, w13, b13, w2_t, b2_r, th=th)
    out = jax.block_until_ready(out)

    ref = _reference(x, w1, b1, w3, b3, w2, b2)
    assert out.shape == (batch, seq, dim)
    # bf16-into-MXU with f32 accumulation vs. f32 reference -> loosened tolerance.
    assert jnp.allclose(out, ref, atol=5e-3, rtol=5e-2), float(
        jnp.max(jnp.abs(out - ref)))

    print("KERNEL_OK")
</pallas_src>

<mosaic_0001>
module attributes {stable_mosaic.version = 11 : i64} {
  func.func @_swiglu_kernel_resident(%arg0: i32, %arg1: memref<8x128xbf16, #tpu.memory_space<vmem>>, %arg2: memref<128x1024xbf16, #tpu.memory_space<vmem>>, %arg3: memref<1x1024xf32, #tpu.memory_space<vmem>>, %arg4: memref<512x128xbf16, #tpu.memory_space<vmem>>, %arg5: memref<1x128xf32, #tpu.memory_space<vmem>>, %arg6: memref<8x128xf32, #tpu.memory_space<vmem>>) attributes {dimension_semantics = [#tpu.dimension_semantics<parallel>], iteration_bounds = array<i64: 2>, scalar_prefetch = 0 : i64, scratch_operands = 0 : i64, tpu.core_type = #tpu.core_type<tc>, window_params = [{transform_indices = @transform_0, window_bounds = array<i64: 8, 128>}, {pipeline_mode = #tpu.pipeline_mode<synchronous>, transform_indices = @transform_1, window_bounds = array<i64: 128, 1024>}, {pipeline_mode = #tpu.pipeline_mode<synchronous>, transform_indices = @transform_2, window_bounds = array<i64: 1, 1024>}, {pipeline_mode = #tpu.pipeline_mode<synchronous>, transform_indices = @transform_3, window_bounds = array<i64: 512, 128>}, {pipeline_mode = #tpu.pipeline_mode<synchronous>, transform_indices = @transform_4, window_bounds = array<i64: 1, 128>}, {transform_indices = @transform_5, window_bounds = array<i64: 8, 128>}]} {
    %c0 = arith.constant 0 : index
    %c0_0 = arith.constant 0 : index
    %0 = vector.load %arg1[%c0, %c0_0] : memref<8x128xbf16, #tpu.memory_space<vmem>>, vector<8x128xbf16>
    %c0_1 = arith.constant 0 : index
    %c0_2 = arith.constant 0 : index
    %1 = vector.load %arg2[%c0_1, %c0_2] : memref<128x1024xbf16, #tpu.memory_space<vmem>>, vector<128x1024xbf16>
    %cst = arith.constant dense<0.000000e+00> : vector<8x1024xf32>
    %2 = tpu.matmul %0, %1, %cst {dimension_numbers = #tpu.dot_dimension_numbers<[1], [0], [0], [1], [0, 0, 1, 1], [], []>} : vector<8x128xbf16>, vector<128x1024xbf16>, vector<8x1024xf32> -> vector<8x1024xf32>
    %c0_3 = arith.constant 0 : index
    %c0_4 = arith.constant 0 : index
    %3 = vector.load %arg3[%c0_3, %c0_4] : memref<1x1024xf32, #tpu.memory_space<vmem>>, vector<1x1024xf32>
    %4 = vector.broadcast %3 : vector<1x1024xf32> to vector<8x1024xf32>
    %5 = arith.addf %2, %4 : vector<8x1024xf32>
    %6 = vector.extract_strided_slice %5 {offsets = [0, 0], sizes = [8, 512], strides = [1, 1]} : vector<8x1024xf32> to vector<8x512xf32>
    %7 = vector.extract_strided_slice %5 {offsets = [0, 512], sizes = [8, 512], strides = [1, 1]} : vector<8x1024xf32> to vector<8x512xf32>
    %8 = arith.negf %6 : vector<8x512xf32>
    %9 = math.exp %8 : vector<8x512xf32>
    %cst_5 = arith.constant 1.000000e+00 : f32
    %10 = vector.broadcast %cst_5 : f32 to vector<8x512xf32>
    %11 = arith.addf %10, %9 : vector<8x512xf32>
    %12 = arith.divf %10, %11 : vector<8x512xf32>
    %13 = arith.mulf %6, %12 : vector<8x512xf32>
    %14 = arith.mulf %13, %7 : vector<8x512xf32>
    %15 = arith.truncf %14 : vector<8x512xf32> to vector<8x512xbf16>
    %c0_6 = arith.constant 0 : index
    %c0_7 = arith.constant 0 : index
    %16 = vector.load %arg4[%c0_6, %c0_7] : memref<512x128xbf16, #tpu.memory_space<vmem>>, vector<512x128xbf16>
    %cst_8 = arith.constant dense<0.000000e+00> : vector<8x128xf32>
    %17 = tpu.matmul %15, %16, %cst_8 {dimension_numbers = #tpu.dot_dimension_numbers<[1], [0], [0], [1], [0, 0, 1, 1], [], []>} : vector<8x512xbf16>, vector<512x128xbf16>, vector<8x128xf32> -> vector<8x128xf32>
    %c0_9 = arith.constant 0 : index
    %c0_10 = arith.constant 0 : index
    %18 = vector.load %arg5[%c0_9, %c0_10] : memref<1x128xf32, #tpu.memory_space<vmem>>, vector<1x128xf32>
    %19 = vector.broadcast %18 : vector<1x128xf32> to vector<8x128xf32>
    %20 = arith.addf %17, %19 : vector<8x128xf32>
    %c0_11 = arith.constant 0 : index
    %c0_12 = arith.constant 0 : index
    %21 = vector.load %arg6[%c0_11, %c0_12] : memref<8x128xf32, #tpu.memory_space<vmem>>, vector<8x128xf32>
    tpu.vector_store %arg6[%c0_11, %c0_12], %20 {strides = array<i32>} : memref<8x128xf32, #tpu.memory_space<vmem>>, vector<8x128xf32>,
    return
  }
  func.func @transform_0(%arg0: i32) -> (i32, i32) {
    %c0_i32 = arith.constant 0 : i32
    %c0_i32_0 = arith.constant 0 : i32
    return %arg0, %c0_i32 : i32, i32
  }
  func.func @transform_1(%arg0: i32) -> (i32, i32) {
    %c0_i32 = arith.constant 0 : i32
    %c0_i32_0 = arith.constant 0 : i32
    %c0_i32_1 = arith.constant 0 : i32
    return %c0_i32, %c0_i32_0 : i32, i32
  }
  func.func @transform_2(%arg0: i32) -> (i32, i32) {
    %c0_i32 = arith.constant 0 : i32
    %c0_i32_0 = arith.constant 0 : i32
    %c0_i32_1 = arith.constant 0 : i32
    return %c0_i32, %c0_i32_0 : i32, i32
  }
  func.func @transform_3(%arg0: i32) -> (i32, i32) {
    %c0_i32 = arith.constant 0 : i32
    %c0_i32_0 = arith.constant 0 : i32
    %c0_i32_1 = arith.constant 0 : i32
    return %c0_i32, %c0_i32_0 : i32, i32
  }
  func.func @transform_4(%arg0: i32) -> (i32, i32) {
    %c0_i32 = arith.constant 0 : i32
    %c0_i32_0 = arith.constant 0 : i32
    %c0_i32_1 = arith.constant 0 : i32
    return %c0_i32, %c0_i32_0 : i32, i32
  }
  func.func @transform_5(%arg0: i32) -> (i32, i32) {
    %c0_i32 = arith.constant 0 : i32
    %c0_i32_0 = arith.constant 0 : i32
    return %arg0, %c0_i32 : i32, i32
  }
}

</mosaic_0001>

<bundles_post_ra>
// kernel: swiglu_ffn_packed.1
= control target key start
LH: loop header
LB: loop body
LE: loop exit
PB: predicated region body
PF: predicated region fallthrough
CT: control target
= control target key end

     0   :  { %10 = vsyncpa [#allocation3], 0  ;;  %s2179_s0 = inlined_call_operand.vmem [shape: bf16[16,128], index: 0, kind: input, shape index: {}]   ;;  %s2180_s1 = inlined_call_operand.hbm [shape: bf16[128,1024], index: 1, kind: input, shape index: {}]   ;;  %s2181_s2 = inlined_call_operand.vmem [shape: f32[1,1024], index: 2, kind: input, shape index: {}]   ;;  %s2182_s3 = inlined_call_operand.hbm [shape: bf16[512,128], index: 3, kind: input, shape index: {}]   ;;  %s2183_s4 = inlined_call_operand.vmem [shape: f32[1,128], index: 4, kind: input, shape index: {}]   ;;  %s2184_s5 = inlined_call_operand.hbm [shape: f32[16,128], index: 5, kind: output, shape index: {}]  }
   0x1   :  { %11 = vsyncpa [#allocation6], 0 }
   0x2   :  { %12 = vsyncpa [#allocation4], 0 }
   0x3   :  { %14 = vsyncpa [#allocation4 + $0x1], 0  ;;  %s2006_s18 = smov 0   ;;  %s2008_s19 = smov 0  }
   0x4   :  { %s2010_s20 = smov 0   ;;  %s2012_s21 = smov 0  }
   0x5 LB: > { %s2027_s22 = sadd.s32 4294967295, %s1968_s21   ;;  %s1259_s23 = sadd.s32 4294967294, %s1968_s21   ;;  %s1968_s21 = sphi %s2012_s21, %s2193_s21   ;;  %s1964_s20 = sphi %s2010_s20, %s2192_s20   ;;  %s1960_s19 = sphi %s2008_s19, %s2191_s19   ;;  %s1956_s18 = sphi %s2006_s18, %s2190_s18  }
   0x6   : > { %s2031_s24 = sadd.s32 1, %s1968_s21   ;;  %s137_s25 = sadd.s32 1, %s1964_s20 }
   0x7   : > { %s134_s26 = ssub.s32 %s1968_s21, %s2031_s24  ;;  %p147_p0 = scmp.ne.s32.totalorder %s1964_s20, %s1960_s19 }
   0x8   : > { %p135_p1 = scmp.eq.s32.totalorder %s134_s26, 0  ;;  %p148_p2 = scmp.eq.s32.totalorder %s2027_s22, 1 }
   0x9   : > { %p153_p3 = scmp.ne.s32.totalorder %s1960_s19, %s1956_s18  ;;  %p154_p4 = scmp.eq.s32.totalorder %s1259_s23, 1 }
   0xa   : > { %s2042_s27 = scalar_select %p135_p1, %s1964_s20, %s137_s25  }
   0xb   : > { %p2044_p5 = por %p148_p2, %p147_p0  ;;  %p2048_p6 = por %p154_p4, %p153_p3 }
   0xc   : > { %p1260_p7 = scmp.ge.s32.totalorder %s1968_s21, 1  ;;  %p161_p8 = scmp.lt.s32.totalorder %s1968_s21, 3 }
   0xd   : > { %p1778_p9 = scmp.eq.s32.totalorder %s2027_s22, 0  ;;  %s172_s8 = sshll.u32 %s2180_s1, 4  ;;  %s173_s8 = int_to_ptr.hbm [resolvable:$true] %s172_s8 }
   0xe   : > { %p2055_p10 = pnand %p1260_p7, %p161_p8  ;;  %s1970_s9 = smov [#allocation2]  }
   0xf   : > { %s174_s10 = sshll.u32 %s1970_s9, 4  ;;  %s189_s13 = sshll.u32 %s2182_s3, 4  ;;  %s175_s10 = int_to_ptr.vmem [resolvable:$true] %s174_s10  ;;  %s190_s13 = int_to_ptr.hbm [resolvable:$true] %s189_s13 }
  0x10   : > { %p1767_p11 = pneg %p2055_p10  ;;  %s1971_s14 = smov 512  }
  0x11   : > { %s1972_s15 = smov 32   ;;  %s1973_s16 = smov [#allocation5]  }
  0x12   : > { %p1768_p12 = pnand %p1778_p9, %p1767_p11  ;;  %s191_s17 = sshll.u32 %s1973_s16, 4  ;;  %s192_s17 = int_to_ptr.vmem [resolvable:$true] %s191_s17 }
  0x13   : > { %s1974_s23 = smov 64   ;;  %s1975_s25 = smov 4  }
  0x14   : > { %1770 = dma.hbm_to_vmem [thread:$0]  (!%p1768_p12), %s173_s8, 8192, %s175_s10, [#allocation3], %s1971_s14, %s1971_s14, %s1972_s15  }
  0x15   : > { %1773 = dma.hbm_to_vmem [thread:$0]  (!%p1768_p12), %s190_s13, 4096, %s192_s17, [#allocation6], %s1974_s23, %s1974_s23, %s1975_s25  }
  0x16   : > { %217 = sbr.rel (%p2055_p10) target bundleno = 377 (0x179), region = 40 }
  0x1b   : > { %1943 = dma.done.wait (%p1778_p9), [#allocation3], 8192  }
  0x1c   : > { %1945 = vsyncadd (%p1778_p9), [#allocation3], 4294959104 }
  0x1d   : > { %1947 = dma.done.wait (%p1778_p9), [#allocation6], 4096  }
  0x1e   : > { %1949 = vsyncadd (%p1778_p9), [#allocation6], 4294963200  ;;  %v1495_v0 = vld [vmem:[#allocation2 + $0x1c0] sm:$0xf]  ;;  %v1717_v2 = vld [vmem:[#allocation2 + $0x1c4] sm:$0xf] }
  0x1f   : > { %v1721_v1 = vld [vmem:[#allocation2 + $0x1dc] sm:$0xf0]  ;;  %v1497_v4 = vld [vmem:[#allocation2 + $0x1e0] sm:$0xf0]  ;;  %v1503_v5 = vld [vmem:[#allocation2 + $0x1c8] sm:$0xf] }
  0x20   : > { %v1496_v3 = vor.u32 %v1721_v1, %v1495_v0  ;;  %v1722_v6 = vld [vmem:[#allocation2 + $0x1e4] sm:$0xf0]  ;;  %v1500_v7 = vor.u32 %v1717_v2, %v1497_v4  ;;  %v1718_v9 = vld [vmem:[#allocation2 + $0x1cc] sm:$0xf]  ;;  %v1463_v11 = vld [vmem:[#allocation2 + $0x180] sm:$0xf] }
  0x21   : > { %v1504_v8 = vor.u32 %v1722_v6, %v1503_v5  ;;  %v1505_v10 = vld [vmem:[#allocation2 + $0x1e8] sm:$0xf0]  ;;  %v1713_v13 = vld [vmem:[#allocation2 + $0x19c] sm:$0xf0]  ;;  %v1709_v14 = vld [vmem:[#allocation2 + $0x184] sm:$0xf] }
  0x22   : > { %657 = vmatpush.bf16.msra.mxu0 %v1496_v3  ;;  %v1508_v12 = vor.u32 %v1718_v9, %v1505_v10  ;;  %v1465_v15 = vld [vmem:[#allocation2 + $0x1a0] sm:$0xf0]  ;;  %670 = vmatpush.bf16.msra.mxu1 %v1500_v7  ;;  %v1464_v16 = vor.u32 %v1713_v13, %v1463_v11  ;;  %v1471_v18 = vld [vmem:[#allocation2 + $0x188] sm:$0xf]  ;;  %v1710_v20 = vld [vmem:[#allocation2 + $0x18c] sm:$0xf] }
  0x23   : > { %683 = vmatpush.bf16.msra.mxu2 %v1504_v8  ;;  %v1468_v17 = vor.u32 %v1709_v14, %v1465_v15  ;;  %v1714_v19 = vld [vmem:[#allocation2 + $0x1a4] sm:$0xf0]  ;;  %v1473_v22 = vld [vmem:[#allocation2 + $0x1a8] sm:$0xf0]  ;;  %v1431_v23 = vld [vmem:[#allocation2 + $0x140] sm:$0xf] }
  0x24   : > { %696 = vmatpush.bf16.msra.mxu3 %v1508_v12  ;;  %v1472_v21 = vor.u32 %v1714_v19, %v1471_v18  ;;  %v1705_v24 = vld [vmem:[#allocation2 + $0x15c] sm:$0xf0]  ;;  %v1476_v25 = vor.u32 %v1710_v20, %v1473_v22  ;;  %v1701_v26 = vld [vmem:[#allocation2 + $0x144] sm:$0xf]  ;;  %v1439_v28 = vld [vmem:[#allocation2 + $0x148] sm:$0xf] }
  0x25   : > { %v1433_v27 = vld [vmem:[#allocation2 + $0x160] sm:$0xf0]  ;;  %v1432_v29 = vor.u32 %v1705_v24, %v1431_v23  ;;  %v1706_v30 = vld [vmem:[#allocation2 + $0x164] sm:$0xf0]  ;;  %v1702_v31 = vld [vmem:[#allocation2 + $0x14c] sm:$0xf] }
  0x26   : > { %658 = vmatpush.bf16.msra.mxu0 %v1464_v16  ;;  %v1441_v32 = vld [vmem:[#allocation2 + $0x168] sm:$0xf0]  ;;  %671 = vmatpush.bf16.msra.mxu1 %v1468_v17  ;;  %v1436_v33 = vor.u32 %v1701_v26, %v1433_v27  ;;  %v1440_v34 = vor.u32 %v1706_v30, %v1439_v28  ;;  %v1399_v35 = vld [vmem:[#allocation2 + $0x100] sm:$0xf]  ;;  %v1693_v37 = vld [vmem:[#allocation2 + $0x104] sm:$0xf] }
  0x27   : > { %684 = vmatpush.bf16.msra.mxu2 %v1472_v21  ;;  %v1697_v36 = vld [vmem:[#allocation2 + $0x11c] sm:$0xf0]  ;;  %v1444_v38 = vor.u32 %v1702_v31, %v1441_v32  ;;  %v1401_v39 = vld [vmem:[#allocation2 + $0x120] sm:$0xf0]  ;;  %v1407_v40 = vld [vmem:[#allocation2 + $0x108] sm:$0xf] }
  0x28   : > { %697 = vmatpush.bf16.msra.mxu3 %v1476_v25  ;;  %v1698_v41 = vld [vmem:[#allocation2 + $0x124] sm:$0xf0]  ;;  %v1694_v42 = vld [vmem:[#allocation2 + $0x10c] sm:$0xf]  ;;  %v1400_v44 = vor.u32 %v1697_v36, %v1399_v35  ;;  %v1404_v45 = vor.u32 %v1693_v37, %v1401_v39  ;;  %v1367_v47 = vld [vmem:[#allocation2 + $0xc0] sm:$0xf] }
  0x29   : > { %v1409_v43 = vld [vmem:[#allocation2 + $0x128] sm:$0xf0]  ;;  %v1408_v46 = vor.u32 %v1698_v41, %v1407_v40  ;;  %v1689_v48 = vld [vmem:[#allocation2 + $0xdc] sm:$0xf0]  ;;  %v1685_v49 = vld [vmem:[#allocation2 + $0xc4] sm:$0xf] }
  0x2a   : > { %659 = vmatpush.bf16.msra.mxu0 %v1432_v29  ;;  %672 = vmatpush.bf16.msra.mxu1 %v1436_v33  ;;  %v1412_v50 = vor.u32 %v1694_v42, %v1409_v43  ;;  %v1369_v51 = vld [vmem:[#allocation2 + $0xe0] sm:$0xf0]  ;;  %v1375_v52 = vld [vmem:[#allocation2 + $0xc8] sm:$0xf]  ;;  %v1686_v54 = vld [vmem:[#allocation2 + $0xcc] sm:$0xf]  ;;  %v1368_v56 = vor.u32 %v1689_v48, %v1367_v47 }
  0x2b   : > { %685 = vmatpush.bf16.msra.mxu2 %v1440_v34  ;;  %v1690_v53 = vld [vmem:[#allocation2 + $0xe4] sm:$0xf0]  ;;  %v1377_v55 = vld [vmem:[#allocation2 + $0xe8] sm:$0xf0]  ;;  %p250_p13 = scmp.lt.s32.totalorder %s2027_s22, 1  ;;  %v1372_v57 = vor.u32 %v1685_v49, %v1369_v51  ;;  %s247_s13 = sand.u32 1, %s1960_s19  }
  0x2c   : > { %698 = vmatpush.bf16.msra.mxu3 %v1444_v38  ;;  %v1376_v58 = vor.u32 %v1690_v53, %v1375_v52  ;;  %v1335_v59 = vld [vmem:[#allocation2 + $0x80] sm:$0xf]  ;;  %v1677_v61 = vld [vmem:[#allocation2 + $0x84] sm:$0xf]  ;;  %v1380_v62 = vor.u32 %v1686_v54, %v1377_v55  ;;  %v1343_v0 = vld [vmem:[#allocation2 + $0x88] sm:$0xf] }
  0x2d   : > { %v1681_v60 = vld [vmem:[#allocation2 + $0x9c] sm:$0xf0]  ;;  %v1337_v63 = vld [vmem:[#allocation2 + $0xa0] sm:$0xf0]  ;;  %v1682_v1 = vld [vmem:[#allocation2 + $0xa4] sm:$0xf0] }
  0x2e   : > { %660 = vmatpush.bf16.msra.mxu0 %v1400_v44  ;;  %673 = vmatpush.bf16.msra.mxu1 %v1404_v45  ;;  %v1678_v2 = vld [vmem:[#allocation2 + $0x8c] sm:$0xf]  ;;  %v1336_v4 = vor.u32 %v1681_v60, %v1335_v59  ;;  %s2083_s26 = scalar_select %p250_p13, %s2027_s22, 1  ;;  %v1340_v5 = vor.u32 %v1677_v61, %v1337_v63  ;;  %v1344_v6 = vor.u32 %v1682_v1, %v1343_v0  ;;  %v1303_v7 = vld [vmem:[#allocation2 + $0x40] sm:$0xf] }
  0x2f   : > { %686 = vmatpush.bf16.msra.mxu2 %v1408_v46  ;;  %v1345_v3 = vld [vmem:[#allocation2 + $0xa8] sm:$0xf0]  ;;  %v1673_v8 = vld [vmem:[#allocation2 + $0x5c] sm:$0xf0]  ;;  %v1669_v9 = vld [vmem:[#allocation2 + $0x44] sm:$0xf] }
  0x30   : > { %699 = vmatpush.bf16.msra.mxu3 %v1412_v50  ;;  %v1348_v10 = vor.u32 %v1678_v2, %v1345_v3  ;;  %v1305_v11 = vld [vmem:[#allocation2 + $0x60] sm:$0xf0]  ;;  %v1311_v12 = vld [vmem:[#allocation2 + $0x48] sm:$0xf]  ;;  %v1670_v14 = vld [vmem:[#allocation2 + $0x4c] sm:$0xf]  ;;  %v1304_v16 = vor.u32 %v1673_v8, %v1303_v7 }
  0x31   : > { %v1674_v13 = vld [vmem:[#allocation2 + $0x64] sm:$0xf0]  ;;  %v1313_v15 = vld [vmem:[#allocation2 + $0x68] sm:$0xf0]  ;;  %v1271_v17 = vld [vmem:[#allocation2] sm:$0xf]  ;;  %v1308_v19 = vor.u32 %v1669_v9, %v1305_v11 }
  0x32   : > { %661 = vmatpush.bf16.msra.mxu0 %v1368_v56  ;;  %674 = vmatpush.bf16.msra.mxu1 %v1372_v57  ;;  %v1665_v18 = vld [vmem:[#allocation2 + $0x1c] sm:$0xf0]  ;;  %s1268_s30 = sshll.u32 %s2083_s26, 2  ;;  %v1312_v20 = vor.u32 %v1674_v13, %v1311_v12  ;;  %v1661_v21 = vld [vmem:[#allocation2 + $0x4] sm:$0xf]  ;;  %v1316_v24 = vor.u32 %v1670_v14, %v1313_v15  ;;  %s1267_s14 = sshll.u32 %s247_s13, 3 }
  0x33   : > { %687 = vmatpush.bf16.msra.mxu2 %v1376_v58  ;;  %v1273_v22 = vld [vmem:[#allocation2 + $0x20] sm:$0xf0]  ;;  %v1279_v23 = vld [vmem:[#allocation2 + $0x8] sm:$0xf]  ;;  %v1662_v26 = vld [vmem:[#allocation2 + $0xc] sm:$0xf]  ;;  %v1272_v31 = vor.u32 %v1665_v18, %v1271_v17  ;;  %s253_s8 = scalar_lea.vmem %s2179_s0, %s1268_s30 }
  0x34   : > { %700 = vmatpush.bf16.msra.mxu3 %v1380_v62  ;;  %v1666_v25 = vld [vmem:[#allocation2 + $0x24] sm:$0xf0]  ;;  %v1281_v27 = vld [vmem:[#allocation2 + $0x28] sm:$0xf0]  ;;  %v1519_v28 = vld [vmem:[#allocation2 + $0x1d8] sm:$0xf]  ;;  %v1276_v35 = vor.u32 %v1661_v21, %v1273_v22 }
  0x35   : > { %v1724_v29 = vld [vmem:[#allocation2 + $0x1f4] sm:$0xf0]  ;;  %v1720_v30 = vld [vmem:[#allocation2 + $0x1dc] sm:$0xf]  ;;  %v1511_v33 = vld [vmem:[#allocation2 + $0x1d0] sm:$0xf]  ;;  %v1280_v36 = vor.u32 %v1666_v25, %v1279_v23  ;;  %v1284_v39 = vor.u32 %v1662_v26, %v1281_v27 }
  0x36   : > { %662 = vmatpush.bf16.msra.mxu0 %v1336_v4  ;;  %675 = vmatpush.bf16.msra.mxu1 %v1340_v5  ;;  %v1521_v32 = vld [vmem:[#allocation2 + $0x1f8] sm:$0xf0]  ;;  %v1723_v34 = vld [vmem:[#allocation2 + $0x1ec] sm:$0xf0]  ;;  %v1719_v37 = vld [vmem:[#allocation2 + $0x1d4] sm:$0xf]  ;;  %v1520_v40 = vor.u32 %v1724_v29, %v1519_v28 }
  0x37   : > { %688 = vmatpush.bf16.msra.mxu2 %v1344_v6  ;;  %v1513_v38 = vld [vmem:[#allocation2 + $0x1f0] sm:$0xf0]  ;;  %v1524_v41 = vor.u32 %v1720_v30, %v1521_v32  ;;  %v1512_v42 = vor.u32 %v1723_v34, %v1511_v33  ;;  %v1487_v43 = vld [vmem:[#allocation2 + $0x198] sm:$0xf]  ;;  %v1712_v45 = vld [vmem:[#allocation2 + $0x19c] sm:$0xf] }
  0x38   : > { %701 = vmatpush.bf16.msra.mxu3 %v1348_v10  ;;  %v1716_v44 = vld [vmem:[#allocation2 + $0x1b4] sm:$0xf0]  ;;  %v1516_v46 = vor.u32 %v1719_v37, %v1513_v38  ;;  %v1489_v47 = vld [vmem:[#allocation2 + $0x1b8] sm:$0xf0]  ;;  %v1479_v48 = vld [vmem:[#allocation2 + $0x190] sm:$0xf] }
  0x39   : > { %v1715_v49 = vld [vmem:[#allocation2 + $0x1ac] sm:$0xf0]  ;;  %v2091_v50 = vld [vmem:[%s253_s8] sm:$0xf]  ;;  %v1711_v51 = vld [vmem:[#allocation2 + $0x194] sm:$0xf]  ;;  %v1488_v53 = vor.u32 %v1716_v44, %v1487_v43  ;;  %v1492_v54 = vor.u32 %v1712_v45, %v1489_v47 }
  0x3a   : > { %663 = vmatpush.bf16.msra.mxu0 %v1304_v16  ;;  %676 = vmatpush.bf16.msra.mxu1 %v1308_v19  ;;  %v1481_v52 = vld [vmem:[#allocation2 + $0x1b0] sm:$0xf0]  ;;  %v1480_v55 = vor.u32 %v1715_v49, %v1479_v48  ;;  %v1455_v56 = vld [vmem:[#allocation2 + $0x158] sm:$0xf]  ;;  %v1704_v58 = vld [vmem:[#allocation2 + $0x15c] sm:$0xf] }
  0x3b   : > { %689 = vmatpush.bf16.msra.mxu2 %v1312_v20  ;;  %v1708_v57 = vld [vmem:[#allocation2 + $0x174] sm:$0xf0]  ;;  %v1484_v59 = vor.u32 %v1711_v51, %v1481_v52  ;;  %v1457_v60 = vld [vmem:[#allocation2 + $0x178] sm:$0xf0]  ;;  %v1447_v61 = vld [vmem:[#allocation2 + $0x150] sm:$0xf] }
  0x3c   : > { %702 = vmatpush.bf16.msra.mxu3 %v1316_v24  ;;  %v1707_v62 = vld [vmem:[#allocation2 + $0x16c] sm:$0xf0]  ;;  %v1703_v63 = vld [vmem:[#allocation2 + $0x154] sm:$0xf]  ;;  %v1456_v1 = vor.u32 %v1708_v57, %v1455_v56  ;;  %v1460_v2 = vor.u32 %v1704_v58, %v1457_v60  ;;  %v1423_v4 = vld [vmem:[#allocation2 + $0x118] sm:$0xf] }
  0x3d   : > { %v1449_v0 = vld [vmem:[#allocation2 + $0x170] sm:$0xf0]  ;;  %v1448_v3 = vor.u32 %v1707_v62, %v1447_v61  ;;  %v1700_v5 = vld [vmem:[#allocation2 + $0x134] sm:$0xf0]  ;;  %v1696_v6 = vld [vmem:[#allocation2 + $0x11c] sm:$0xf] }
  0x3e   : > { %664 = vmatpush.bf16.msra.mxu0 %v1272_v31  ;;  %677 = vmatpush.bf16.msra.mxu1 %v1276_v35  ;;  %v1452_v7 = vor.u32 %v1703_v63, %v1449_v0  ;;  %v1425_v8 = vld [vmem:[#allocation2 + $0x138] sm:$0xf0]  ;;  %v1415_v9 = vld [vmem:[#allocation2 + $0x110] sm:$0xf]  ;;  %v1695_v11 = vld [vmem:[#allocation2 + $0x114] sm:$0xf]  ;;  %v1424_v13 = vor.u32 %v1700_v5, %v1423_v4 }
  0x3f   : > { %690 = vmatpush.bf16.msra.mxu2 %v1280_v36  ;;  %v1699_v10 = vld [vmem:[#allocation2 + $0x12c] sm:$0xf0]  ;;  %v1417_v12 = vld [vmem:[#allocation2 + $0x130] sm:$0xf0]  ;;  %v1391_v14 = vld [vmem:[#allocation2 + $0xd8] sm:$0xf]  ;;  %v1428_v15 = vor.u32 %v1696_v6, %v1425_v8 }
  0x40   : > { %703 = vmatpush.bf16.msra.mxu3 %v1284_v39  ;;  %v1416_v16 = vor.u32 %v1699_v10, %v1415_v9  ;;  %v1692_v17 = vld [vmem:[#allocation2 + $0xf4] sm:$0xf0]  ;;  %v1688_v18 = vld [vmem:[#allocation2 + $0xdc] sm:$0xf]  ;;  %v1420_v20 = vor.u32 %v1695_v11, %v1417_v12  ;;  %v1383_v21 = vld [vmem:[#allocation2 + $0xd0] sm:$0xf] }
  0x41   : > { %665 = vmatmul.bf16.vlgmr.msra.gmra.mxu0 %v2091_v50  ;;  %678 = vmatmul.bf16.vlgmr.msra.gmra.mxu1 %v2091_v50  ;;  %v1393_v19 = vld [vmem:[#allocation2 + $0xf8] sm:$0xf0]  ;;  %v1691_v22 = vld [vmem:[#allocation2 + $0xec] sm:$0xf0]  ;;  %v1687_v23 = vld [vmem:[#allocation2 + $0xd4] sm:$0xf]  ;;  %v1392_v25 = vor.u32 %v1692_v17, %v1391_v14 }
  0x42   : > { %709 = vmatpush.bf16.msrb.mxu0 %v1512_v42  ;;  %722 = vmatpush.bf16.msrb.mxu1 %v1516_v46  ;;  %v1385_v24 = vld [vmem:[#allocation2 + $0xf0] sm:$0xf0]  ;;  %v1396_v26 = vor.u32 %v1688_v18, %v1393_v19  ;;  %v1384_v27 = vor.u32 %v1691_v22, %v1383_v21  ;;  %v1359_v28 = vld [vmem:[#allocation2 + $0x98] sm:$0xf]  ;;  %v1680_v30 = vld [vmem:[#allocation2 + $0x9c] sm:$0xf] }
  0x43   : > { %735 = vmatpush.bf16.msrb.mxu2 %v1520_v40  ;;  %704 = vmatmul.bf16.vlgmr.msra.gmra.mxu3 %v2091_v50  ;;  %v1684_v29 = vld [vmem:[#allocation2 + $0xb4] sm:$0xf0]  ;;  %v1388_v31 = vor.u32 %v1687_v23, %v1385_v24  ;;  %v1361_v32 = vld [vmem:[#allocation2 + $0xb8] sm:$0xf0]  ;;  %v1351_v33 = vld [vmem:[#allocation2 + $0x90] sm:$0xf] }
  0x44   : > { %748 = vmatpush.bf16.msrb.mxu3 %v1524_v41  ;;  %691 = vmatmul.bf16.vlgmr.msra.gmra.mxu2 %v2091_v50  ;;  %v1683_v34 = vld [vmem:[#allocation2 + $0xac] sm:$0xf0]  ;;  %v1679_v35 = vld [vmem:[#allocation2 + $0x94] sm:$0xf]  ;;  %v1360_v37 = vor.u32 %v1684_v29, %v1359_v28  ;;  %v1364_v38 = vor.u32 %v1680_v30, %v1361_v32  ;;  %v1327_v40 = vld [vmem:[#allocation2 + $0x58] sm:$0xf] }
  0x45   : > { %v1353_v36 = vld [vmem:[#allocation2 + $0xb0] sm:$0xf0]  ;;  %v1352_v39 = vor.u32 %v1683_v34, %v1351_v33  ;;  %v1676_v41 = vld [vmem:[#allocation2 + $0x74] sm:$0xf0]  ;;  %v1672_v42 = vld [vmem:[#allocation2 + $0x5c] sm:$0xf] }
  0x46   : > { %710 = vmatpush.bf16.msrb.mxu0 %v1480_v55  ;;  %723 = vmatpush.bf16.msrb.mxu1 %v1484_v59  ;;  %v1356_v43 = vor.u32 %v1679_v35, %v1353_v36  ;;  %v1329_v44 = vld [vmem:[#allocation2 + $0x78] sm:$0xf0]  ;;  %v1319_v45 = vld [vmem:[#allocation2 + $0x50] sm:$0xf]  ;;  %v1671_v47 = vld [vmem:[#allocation2 + $0x54] sm:$0xf]  ;;  %v1328_v49 = vor.u32 %v1676_v41, %v1327_v40 }
  0x47   : > { %736 = vmatpush.bf16.msrb.mxu2 %v1488_v53  ;;  %v1675_v46 = vld [vmem:[#allocation2 + $0x6c] sm:$0xf0]  ;;  %v1321_v48 = vld [vmem:[#allocation2 + $0x70] sm:$0xf0]  ;;  %v1332_v51 = vor.u32 %v1672_v42, %v1329_v44  ;;  %v1295_v53 = vld [vmem:[#allocation2 + $0x18] sm:$0xf] }
  0x48   : > { %749 = vmatpush.bf16.msrb.mxu3 %v1492_v54  ;;  %v1320_v52 = vor.u32 %v1675_v46, %v1319_v45  ;;  %v1668_v54 = vld [vmem:[#allocation2 + $0x34] sm:$0xf0]  ;;  %v1664_v55 = vld [vmem:[#allocation2 + $0x1c] sm:$0xf]  ;;  %v1324_v56 = vor.u32 %v1671_v47, %v1321_v48  ;;  %v1287_v58 = vld [vmem:[#allocation2 + $0x10] sm:$0xf] }
  0x49   : > { %v1297_v57 = vld [vmem:[#allocation2 + $0x38] sm:$0xf0]  ;;  %v1667_v59 = vld [vmem:[#allocation2 + $0x2c] sm:$0xf0]  ;;  %v1663_v60 = vld [vmem:[#allocation2 + $0x14] sm:$0xf]  ;;  %v1296_v62 = vor.u32 %v1668_v54, %v1295_v53 }
  0x4a   : > { %711 = vmatpush.bf16.msrb.mxu0 %v1448_v3  ;;  %724 = vmatpush.bf16.msrb.mxu1 %v1452_v7  ;;  %v1289_v61 = vld [vmem:[#allocation2 + $0x30] sm:$0xf0]  ;;  %v1300_v63 = vor.u32 %v1664_v55, %v1297_v57  ;;  %v1288_v0 = vor.u32 %v1667_v59, %v1287_v58  ;;  %v1740_v3 = vld [vmem:[#allocation5 + $0x78] sm:$0xff]  ;;  %v1730_v8 = vld [vmem:[#allocation5 + $0x28] sm:$0xff]  ;;  %s1658_s15 = sshll.u32 %s2027_s22, 3  ;;  %s249_s25 = scalar_lea.vmem [#allocation7], %s1267_s14 }
  0x4b   : > { %737 = vmatpush.bf16.msrb.mxu2 %v1456_v1  ;;  %v1292_v1 = vor.u32 %v1663_v60, %v1289_v61  ;;  %v1731_v4 = vld [vmem:[#allocation5 + $0x30] sm:$0xff]  ;;  %v1748_v6 = vld [vmem:[#allocation5 + $0xb8] sm:$0xff]  ;;  %v1738_v9 = vld [vmem:[#allocation5 + $0x68] sm:$0xff]  ;;  %s1173_s23 = scalar_lea.hbm %s2184_s5, %s1658_s15  ;;  %s1175_s26 = sshll.u32 %s249_s25, 4  ;;  %s1176_s26 = int_to_ptr.vmem [resolvable:$true] %s1175_s26 }
  0x4c   : > { %750 = vmatpush.bf16.msrb.mxu3 %v1460_v2  ;;  %v1732_v2 = vld [vmem:[#allocation5 + $0x38] sm:$0xff]  ;;  %v1739_v5 = vld [vmem:[#allocation5 + $0x70] sm:$0xff]  ;;  %v1737_v12 = vld [vmem:[#allocation5 + $0x60] sm:$0xff]  ;;  %s1177_s30 = sshll.u32 %s1173_s23, 4  ;;  %s1163_s22 = scalar_lea.sflag [#allocation4], %s247_s13  ;;  %s1178_s30 = int_to_ptr.hbm [resolvable:$true] %s1177_s30 }
  0x4d   : > { %v1756_v7 = vld [vmem:[#allocation5 + $0xf8] sm:$0xff]  ;;  %v1747_v10 = vld [vmem:[#allocation5 + $0xb0] sm:$0xff]  ;;  %v1754_v14 = vld [vmem:[#allocation5 + $0xe8] sm:$0xff]  ;;  %s1912_s6 = sshra.s32 %s1178_s30, 4  ;;  %s1918_s10 = scalar_lea.hbm %s2184_s5, 16  ;;  %s1913_s6 = int_to_ptr.hbm [resolvable:$true] %s1912_s6 }
  0x4e   : > { %712 = vmatpush.bf16.msrb.mxu0 %v1416_v16  ;;  %725 = vmatpush.bf16.msrb.mxu1 %v1420_v20  ;;  %v1755_v11 = vld [vmem:[#allocation5 + $0xf0] sm:$0xff]  ;;  %v1736_v16 = vld [vmem:[#allocation5 + $0x58] sm:$0xff]  ;;  %v2104_v17 = vld [vmem:[%s2181_s2] sm:$0xff]  ;;  %s1914_s7 = scalar_lea.hbm %s1913_s6, 8  ;;  %p1919_p3 = scmp.lt.s32.totalorder %s1913_s6, %s2184_s5 }
  0x4f   : > { %738 = vmatpush.bf16.msrb.mxu2 %v1424_v13  ;;  %v1746_v13 = vld [vmem:[#allocation5 + $0xa8] sm:$0xff]  ;;  %v1745_v18 = vld [vmem:[#allocation5 + $0xa0] sm:$0xff]  ;;  %v1727_v20 = vld [vmem:[#allocation5 + $0x10] sm:$0xff]  ;;  %v321_v22 = vperm.slane %v2104_v17, 0  ;;  %v322_v23 = vperm.slane %v2104_v17, 1  ;;  %v323_v36 = vperm.slane %v2104_v17, 2  ;;  %p1915_p0 = scmp.ne.s32.totalorder %s1913_s6, %s1914_s7  ;;  %p1920_p4 = scmp.lt.s32.totalorder %s1918_s10, %s1914_s7 }
  0x50   : > { %751 = vmatpush.bf16.msrb.mxu3 %v1428_v15  ;;  %v1728_v15 = vld [vmem:[#allocation5 + $0x18] sm:$0xff]  ;;  %v1753_v19 = vld [vmem:[#allocation5 + $0xe0] sm:$0xff]  ;;  %v1735_v21 = vld [vmem:[#allocation5 + $0x50] sm:$0xff] }
  0x51   : > { %v1744_v24 = vld [vmem:[#allocation5 + $0x98] sm:$0xff]  ;;  %v1734_v28 = vld [vmem:[#allocation5 + $0x48] sm:$0xff]  ;;  %v1743_v32 = vld [vmem:[#allocation5 + $0x90] sm:$0xff]  ;;  %p1916_p1 = pnand %p1915_p0, %p2044_p5  ;;  %p1921_p7 = por %p1920_p4, %p1919_p3 }
  0x52   : > { %713 = vmatpush.bf16.msrb.mxu0 %v1384_v27  ;;  %726 = vmatpush.bf16.msrb.mxu1 %v1388_v31  ;;  %v1726_v27 = vld [vmem:[#allocation5 + $0x8] sm:$0xff]  ;;  %v1751_v33 = vld [vmem:[#allocation5 + $0xd0] sm:$0xff] }
  0x53   : > { %739 = vmatpush.bf16.msrb.mxu2 %v1392_v25  ;;  %v1752_v25 = vld [vmem:[#allocation5 + $0xd8] sm:$0xff]  ;;  %v1742_v40 = vld [vmem:[#allocation5 + $0x88] sm:$0xff]  ;;  %p1917_p2 = pneg %p1916_p1 }
  0x54   : > { %752 = vmatpush.bf16.msrb.mxu3 %v1396_v26  ;;  %v1750_v41 = vld [vmem:[#allocation5 + $0xc8] sm:$0xff] }
  0x55   : > { %p1922_p8 = pnand %p1921_p7, %p1917_p2 }
  0x56   : > { %714 = vmatpush.bf16.msrb.mxu0 %v1352_v39  ;;  %727 = vmatpush.bf16.msrb.mxu1 %v1356_v43  ;;  %v324_v39 = vperm.slane %v2104_v17, 3 }
  0x57   : > { %740 = vmatpush.bf16.msrb.mxu2 %v1360_v37  ;;  %v1725_v37 = vld [vmem:[#allocation5] sm:$0xff] }
  0x58   : > { %753 = vmatpush.bf16.msrb.mxu3 %v1364_v38  ;;  %v1733_v38 = vld [vmem:[#allocation5 + $0x40] sm:$0xff] }
  0x5a   : > { %715 = vmatpush.bf16.msrb.mxu0 %v1320_v52  ;;  %728 = vmatpush.bf16.msrb.mxu1 %v1324_v56 }
  0x5b   : > { %741 = vmatpush.bf16.msrb.mxu2 %v1328_v49  ;;  %v1741_v49 = vld [vmem:[#allocation5 + $0x80] sm:$0xff] }
  0x5c   : > { %754 = vmatpush.bf16.msrb.mxu3 %v1332_v51  ;;  %v1749_v51 = vld [vmem:[#allocation5 + $0xc0] sm:$0xff] }
  0x5e   : > { %716 = vmatpush.bf16.msrb.mxu0 %v1288_v0  ;;  %729 = vmatpush.bf16.msrb.mxu1 %v1292_v1 }
  0x5f   : > { %742 = vmatpush.bf16.msrb.mxu2 %v1296_v62 }
  0x60   : > { %755 = vmatpush.bf16.msrb.mxu3 %v1300_v63 }
  0x61   : > { %717 = vmatmul.bf16.vlgmr.msrb.gmra.mxu0 %v2091_v50  ;;  %730 = vmatmul.bf16.vlgmr.msrb.gmra.mxu1 %v2091_v50 }
  0x62   : > { %743 = vmatmul.bf16.vlgmr.msrb.gmra.mxu2 %v2091_v50  ;;  %1109 = vmatpush.bf16.msra.mxu0 %v1732_v2 }
  0x63   : > { %756 = vmatmul.bf16.vlgmr.msrb.gmra.mxu3 %v2091_v50  ;;  %1122 = vmatpush.bf16.msra.mxu1 %v1740_v3  ;;  %v1729_v50 = vld [vmem:[#allocation5 + $0x20] sm:$0xff] }
  0x64   : > { %1135 = vmatpush.bf16.msra.mxu2 %v1748_v6  ;;  %1148 = vmatpush.bf16.msra.mxu3 %v1756_v7 }
  0x66   : > { %1110 = vmatpush.bf16.msra.mxu0 %v1731_v4 }
  0x67   : > { %1123 = vmatpush.bf16.msra.mxu1 %v1739_v5 }
  0x68   : > { %1136 = vmatpush.bf16.msra.mxu2 %v1747_v10  ;;  %1149 = vmatpush.bf16.msra.mxu3 %v1755_v11  ;;  %v325_v11 = vperm.slane %v2104_v17, 4 }
  0x6a   : > { %1111 = vmatpush.bf16.msra.mxu0 %v1730_v8 }
  0x6b   : > { %1124 = vmatpush.bf16.msra.mxu1 %v1738_v9 }
  0x6c   : > { %1137 = vmatpush.bf16.msra.mxu2 %v1746_v13  ;;  %1150 = vmatpush.bf16.msra.mxu3 %v1754_v14 }
  0x6e   : > { %1112 = vmatpush.bf16.msra.mxu0 %v1729_v50  ;;  %v326_v50 = vperm.slane %v2104_v17, 5 }
  0x6f   : > { %1125 = vmatpush.bf16.msra.mxu1 %v1737_v12 }
  0x70   : > { %1138 = vmatpush.bf16.msra.mxu2 %v1745_v18  ;;  %1151 = vmatpush.bf16.msra.mxu3 %v1753_v19  ;;  %v328_v18 = vperm.slane %v2104_v17, 7 }
  0x72   : > { %1113 = vmatpush.bf16.msra.mxu0 %v1728_v15 }
  0x73   : > { %1126 = vmatpush.bf16.msra.mxu1 %v1736_v16  ;;  %v327_v16 = vperm.slane %v2104_v17, 6 }
  0x74   : > { %1139 = vmatpush.bf16.msra.mxu2 %v1744_v24  ;;  %1152 = vmatpush.bf16.msra.mxu3 %v1752_v25 }
  0x76   : > { %1114 = vmatpush.bf16.msra.mxu0 %v1727_v20 }
  0x77   : > { %1127 = vmatpush.bf16.msra.mxu1 %v1735_v21 }
  0x78   : > { %1140 = vmatpush.bf16.msra.mxu2 %v1743_v32  ;;  %1153 = vmatpush.bf16.msra.mxu3 %v1751_v33 }
  0x7a   : > { %1115 = vmatpush.bf16.msra.mxu0 %v1726_v27 }
  0x7b   : > { %1128 = vmatpush.bf16.msra.mxu1 %v1734_v28 }
  0x7c   : > { %1141 = vmatpush.bf16.msra.mxu2 %v1742_v40  ;;  %1154 = vmatpush.bf16.msra.mxu3 %v1750_v41 }
  0x7e   : > { %1116 = vmatpush.bf16.msra.mxu0 %v1725_v37 }
  0x7f   : > { %1129 = vmatpush.bf16.msra.mxu1 %v1733_v38 }
  0x80   : > { %1142 = vmatpush.bf16.msra.mxu2 %v1741_v49  ;;  %1155 = vmatpush.bf16.msra.mxu3 %v1749_v51 }
  0xbe   : > { %v666_v26 = vpop.f32.mrf.mxu0  ;;  %v679_v30 = vpop.f32.mrf.mxu1 }
  0xbf   : > { %v2108_v29 = vadd.f32 %v666_v26, %v321_v22  ;;  %v2110_v31 = vadd.f32 %v679_v30, %v322_v23 }
  0xc1   : > { %v1525_v34 = vmul.f32 -1.442695, %v2108_v29  ;;  %v1526_v35 = vmul.f32 -1.442695, %v2110_v31 }
  0xc3   : > { %1822 = vpow2.f32 %v1525_v34 }
  0xc4   : > { %1824 = vpow2.f32 %v1526_v35 }
  0xc6   : > { %v705_v44 = vpop.f32.mrf.mxu3  ;;  %v668_v45 = vpop.f32.mrf.mxu0 }
  0xc7   : > { %v692_v42 = vpop.f32.mrf.mxu2  ;;  %v2118_v46 = vadd.f32 %v705_v44, %v324_v39  ;;  %v681_v47 = vpop.f32.mrf.mxu1 }
  0xc8   : > { %v2116_v43 = vadd.f32 %v692_v42, %v323_v36 }
  0xc9   : > { %v1823_v52 = vpop.eup %1822  ;;  %v1528_v53 = vmul.f32 -1.442695, %v2118_v46 }
  0xca   : > { %v1527_v48 = vmul.f32 -1.442695, %v2116_v43  ;;  %v1825_v54 = vpop.eup %1824  ;;  %v773_v55 = vadd.f32 1.0, %v1823_v52 }
  0xcb   : > { %v774_v56 = vadd.f32 1.0, %v1825_v54 }
  0xcc   : > { %1826 = vpow2.f32 %v1527_v48  ;;  %v788_v4 = vand.u32 2147483648, %v773_v55  ;;  %vm782_vm2 = vweird.f32 %v773_v55  ;;  %v786_v9 = vand.u32 2147483647, %v773_v55 }
  0xcd   : > { %1828 = vpow2.f32 %v1528_v53  ;;  %v803_v5 = vand.u32 2147483648, %v774_v56  ;;  %vm797_vm0 = vweird.f32 %v774_v56  ;;  %v801_v7 = vand.u32 2147483647, %v774_v56 }
  0xce   : > { %1830 = vrcp.f32 %v773_v55  ;;  %v707_v58 = vpop.f32.mrf.mxu3  ;;  %v789_v19 = vor.u32 1.1754944e-38, %v788_v4  ;;  %vm787_vm7 = vcmp.eq.f32.partialorder %v786_v9, 8.507059e+37 }
  0xcf   : > { %1832 = vrcp.f32 %v774_v56  ;;  %v694_v57 = vpop.f32.mrf.mxu2  ;;  %v804_v15 = vor.u32 1.1754944e-38, %v803_v5  ;;  %vm802_vm6 = vcmp.eq.f32.partialorder %v801_v7, 8.507059e+37  ;;  %v1821_v7 = vld [vmem:[%s2183_s4] ss:$0 sm:$0xff] }
  0xd2   : > { %v1827_v59 = vpop.eup %1826 }
  0xd3   : > { %v1829_v60 = vpop.eup %1828  ;;  %v775_v61 = vadd.f32 1.0, %v1827_v59 }
  0xd4   : > { %v1831_v62 = vpop.eup %1830  ;;  %v2122_v63 = vadd.f32 1.0, %v1829_v60 }
  0xd5   : > { %v1833_v0 = vpop.eup %1832  ;;  %v778_v1 = vmul.f32 %v1831_v62, %v773_v55  ;;  %1834 = vrcp.f32 %v775_v61  ;;  %vm783_vm3 = vweird.f32 %v1831_v62  ;;  %v816_v24 = vand.u32 2147483647, %v775_v61 }
  0xd6   : > { %v793_v2 = vmul.f32 %v1833_v0, %v774_v56  ;;  %1836 = vrcp.f32 %v2122_v63  ;;  %vm798_vm1 = vweird.f32 %v1833_v0  ;;  %vm784_vm5 = vmor %vm782_vm2, %vm783_vm3  ;;  %v818_v25 = vand.u32 2147483648, %v775_v61 }
  0xd7   : > { %v779_v3 = vsub.f32 1.0, %v778_v1  ;;  %vm2127_vm4 = vmor %vm797_vm0, %vm798_vm1  ;;  %vm812_vm9 = vweird.f32 %v775_v61  ;;  %v831_v40 = vand.u32 2147483647, %v2122_v63  ;;  %v833_v41 = vand.u32 2147483648, %v2122_v63 }
  0xd8   : > { %v794_v6 = vsub.f32 1.0, %v793_v2  ;;  %vm817_vm12 = vcmp.eq.f32.partialorder %v816_v24, 8.507059e+37  ;;  %vm827_vm13 = vweird.f32 %v2122_v63 }
  0xd9   : > { %v780_v8 = vmul.f32 %v1831_v62, %v779_v3  ;;  %v834_v56 = vor.u32 1.1754944e-38, %v833_v41  ;;  %vm832_vm15 = vcmp.eq.f32.partialorder %v831_v40, 8.507059e+37 }
  0xda   : > { %v795_v10 = vmul.f32 %v1833_v0, %v794_v6 }
  0xdb   : > { %v1835_v12 = vpop.eup %1834  ;;  %v781_v13 = vadd.f32 %v1831_v62, %v780_v8 }
  0xdc   : > { %v796_v20 = vadd.f32 %v1833_v0, %v795_v10  ;;  %v808_v21 = vmul.f32 %v1835_v12, %v775_v61  ;;  %v1837_v22 = vpop.eup %1836  ;;  %vm813_vm8 = vweird.f32 %v1835_v12 }
  0xdd   : > { %v785_v23 = vsel %vm784_vm5, %v1831_v62, %v781_v13  ;;  %v823_v30 = vmul.f32 %v1837_v22, %v2122_v63  ;;  %vm828_vm10 = vweird.f32 %v1837_v22  ;;  %vm814_vm11 = vmor %vm812_vm9, %vm813_vm8 }
  0xde   : > { %v790_v26 = vsel %vm787_vm7, %v789_v19, %v785_v23  ;;  %v800_v27 = vsel %vm2127_vm4, %v1833_v0, %v796_v20  ;;  %v809_v28 = vsub.f32 1.0, %v808_v21  ;;  %v718_v32 = vpop.f32.mrf.mxu0  ;;  %v731_v35 = vpop.f32.mrf.mxu1  ;;  %vm829_vm14 = vmor %vm827_vm13, %vm828_vm10 }
  0xdf   : > { %v837_v17 = vmul.f32 %v790_v26, %v2108_v29  ;;  %v805_v33 = vsel %vm802_vm6, %v804_v15, %v800_v27  ;;  %v719_v34 = vadd.f32 %v718_v32, %v325_v11  ;;  %v824_v38 = vsub.f32 1.0, %v823_v30 }
  0xe0   : > { %v838_v36 = vmul.f32 %v805_v33, %v2110_v31  ;;  %v810_v37 = vmul.f32 %v1835_v12, %v809_v28  ;;  %v732_v39 = vadd.f32 %v731_v35, %v326_v50  ;;  %v819_v29 = vor.u32 1.1754944e-38, %v818_v25 }
  0xe1   : > { %v841_v42 = vmul.f32 %v837_v17, %v719_v34  ;;  %v825_v45 = vmul.f32 %v1837_v22, %v824_v38 }
  0xe2   : > { %v811_v44 = vadd.f32 %v1835_v12, %v810_v37  ;;  %v842_v47 = vmul.f32 %v838_v36, %v732_v39 }
  0xe3   : > { %v845_v31 = vpack.c.bf16 %v841_v42, %v841_v42  ;;  %v826_v51 = vadd.f32 %v1837_v22, %v825_v45 }
  0xe4   : > { %v815_v49 = vsel %vm814_vm11, %v1835_v12, %v811_v44  ;;  %v846_v52 = vpack.c.bf16 %v842_v47, %v842_v47 }
  0xe5   : > { %v744_v48 = vpop.f32.mrf.mxu2  ;;  %v820_v55 = vsel %vm817_vm12, %v819_v29, %v815_v49  ;;  %1117 = vmatmul.bf16.vlgmr.msra.gmra.mxu0 %v845_v31  ;;  %v830_v58 = vsel %vm829_vm14, %v1837_v22, %v826_v51 }
  0xe6   : > { %v745_v53 = vadd.f32 %v744_v48, %v327_v16  ;;  %v757_v54 = vpop.f32.mrf.mxu3  ;;  %v839_v57 = vmul.f32 %v820_v55, %v2116_v43  ;;  %1130 = vmatmul.bf16.vlgmr.msra.gmra.mxu1 %v846_v52  ;;  %v720_v60 = vpop.f32.mrf.mxu0  ;;  %v835_v61 = vsel %vm832_vm15, %v834_v56, %v830_v58 }
  0xe7   : > { %v758_v59 = vadd.f32 %v757_v54, %v328_v18  ;;  %v733_v62 = vpop.f32.mrf.mxu1  ;;  %v840_v63 = vmul.f32 %v835_v61, %v2118_v46 }
  0xe8   : > { %v843_v0 = vmul.f32 %v839_v57, %v745_v53 }
  0xe9   : > { %v844_v2 = vmul.f32 %v840_v63, %v758_v59 }
  0xea   : > { %v847_v1 = vpack.c.bf16 %v843_v0, %v843_v0 }
  0xeb   : > { %v848_v4 = vpack.c.bf16 %v844_v2, %v844_v2 }
  0xec   : > { %1143 = vmatmul.bf16.vlgmr.msra.gmra.mxu2 %v847_v1 }
  0xed   : > { %v746_v3 = vpop.f32.mrf.mxu2  ;;  %1156 = vmatmul.bf16.vlgmr.msra.gmra.mxu3 %v848_v4 }
  0xee   : > { %v759_v5 = vpop.f32.mrf.mxu3 }
 0x162   : > { %v1118_v43 = vpop.f32.mrf.mxu0 }
 0x163   : > { %v1131_v6 = vpop.f32.mrf.mxu1  ;;  %v1119_v8 = vadd.f32 %v1821_v7, %v1118_v43 }
 0x165   : > { %v1132_v10 = vadd.f32 %v1131_v6, %v1119_v8 }
 0x16a   : > { %v1120_v9 = vpop.f32.mrf.mxu0 }
 0x16b   : > { %v1133_v46 = vpop.f32.mrf.mxu1 }
 0x16f   : > { %v1144_v11 = vpop.f32.mrf.mxu2 }
 0x170   : > { %v1145_v50 = vadd.f32 %v1144_v11, %v1132_v10  ;;  %v1157_v12 = vpop.f32.mrf.mxu3 }
 0x172   : > { %v1158_v13 = vadd.f32 %v1157_v12, %v1145_v50 }
 0x174   : > { %1161 = vst [vmem:[%s249_s25] sm:$0xff] %v1158_v13 }
 0x175   : > { %1925 = shalt.err (!%p1922_p8)
}
 0x176   : > { %1765 = dma.vmem_to_hbm [thread:$0]  (%p2044_p5), %s1176_s26, 128, %s1178_s30, %s1163_s22  }
 0x177   : > { %v1146_v14 = vpop.f32.mrf.mxu2 }
 0x178   : > { %v1159_v15 = vpop.f32.mrf.mxu3 }
 0x179 PF: > { %p1782_p9 = scmp.ge.s32.totalorder %s1968_s21, 2  ;;  %s1189_s13 = sand.u32 1, %s1956_s18  }
 0x17a   : > { %s1190_s14 = scalar_lea.sflag [#allocation4], %s1189_s13 }
 0x17b   : > { %p1775_p10 = pnand %p1782_p9, %p2048_p6 }
 0x17d   : > { %p1776_p11 = pneg %p1775_p10 }
 0x17f   : > { %1951 = dma.done.wait (%p1776_p11), %s1190_s14, 128  }
 0x180   : > { %1953 = vsyncadd (%p1776_p11), %s1190_s14, 4294967168  ;;  %p17_p5 = scmp.ge.s32.totalorder %s2031_s24, 4   ;;  %s2190_s18 = smov %s1960_s19 }
 0x181   : > { %s2191_s19 = smov %s1964_s20  ;;  %s2192_s20 = smov %s2042_s27 }
 0x182   : > { %s2193_s21 = smov %s2031_s24  ;;  %19 = sbr.rel (!%p17_p5) target bundleno = 5 (0x5), region = 84 }
 0x187   :  { %1196 = vsyncpa [#allocation3], 1 }
 0x188   :  { %1198 = vsyncpa [#allocation3 + $0x1], 1 }
 0x189   :  { %1199 = vsyncpa [#allocation6], 1 }
 0x18a   :  { %1200 = vsyncpa [#allocation4], 1 }
 0x18b   :  { %1202 = vsyncpa [#allocation4 + $0x1], 1 }

</bundles_post_ra>
